<compile_context>
chip_gen: v5e
topology: v5e:2x2
jax: 0.10.0
libtpu: 0.0.40
codegen_flags: <defaults>
</compile_context>

<pallas_src>
import numpy as np
import jax
import jax.numpy as jnp
from jax import lax
from jax.experimental import pallas as pl
from jax.experimental.pallas import tpu as pltpu

N_QUBITS = 4
N_LAYERS = 2                       # compile-time constant (args.n_layers)
DIM = 1 << N_QUBITS                # 16 computational-basis states
LANES = 128                        # full vreg lane width

_IDX = np.arange(DIM)
_BITS = [((_IDX >> (N_QUBITS - 1 - q)) & 1).astype(bool) for q in range(N_QUBITS)]
_FLIPS = [_IDX ^ (1 << (N_QUBITS - 1 - q)) for q in range(N_QUBITS)]


# ----------------------------------------------------------------------------
# Capability probe (run once at import, on-device): in-kernel EUP sin/cos.
# ----------------------------------------------------------------------------
def _vector_trig_supported():
    def k(x_ref, o_ref):
        o_ref[...] = jnp.sin(x_ref[...]) + jnp.cos(x_ref[...])
    try:
        out = pl.pallas_call(
            k, out_shape=jax.ShapeDtypeStruct((8, LANES), jnp.float32)
        )(jnp.zeros((8, LANES), jnp.float32))
        jax.block_until_ready(out)
        return bool(np.isfinite(np.asarray(out)).all())
    except Exception:
        return False


_TRIG_IN_KERNEL = _vector_trig_supported()


# ----------------------------------------------------------------------------
# Once-per-weight-update fold of the ansatz (RY/RZ + 'mod' CNOTs) into a real
# (32,32) matrix M so that  [re_out | im_out] = [re_in | im_in] @ M.
# TODO(synk): this runs as plain jitted XLA (not Pallas) — it is outside the
# per-action hot path and only recomputed when the weights change.
# ----------------------------------------------------------------------------
@jax.jit
def build_weight_matrix(weights):
    w = weights.astype(jnp.float32).reshape(N_LAYERS, N_QUBITS, 2)
    u_re = jnp.eye(DIM, dtype=jnp.float32)
    u_im = jnp.zeros((DIM, DIM), jnp.float32)
    for l in range(N_LAYERS):
        for q in range(N_QUBITS):
            bit = _BITS[q][:, None]
            flip = _FLIPS[q]
            # RY(theta): [[c, -s], [s, c]]
            c, s = jnp.cos(0.5 * w[l, q, 0]), jnp.sin(0.5 * w[l, q, 0])
            off = jnp.where(bit, s, -s)
            u_re, u_im = (c * u_re + off * u_re[flip],
                          c * u_im + off * u_im[flip])
            # RZ(theta): diag(e^{-i th/2}, e^{+i th/2})
            c, s = jnp.cos(0.5 * w[l, q, 1]), jnp.sin(0.5 * w[l, q, 1])
            ph = jnp.where(bit, s, -s)
            u_re, u_im = (c * u_re - ph * u_im,
                          c * u_im + ph * u_re)
        l_eff = 0 if ((l + 1) % N_QUBITS == 0) else l
        for q1 in range(N_QUBITS):                      # entanglement == 'mod'
            ctrl, tgt = q1, (q1 + l_eff + 1) % N_QUBITS
            cbit = (_IDX >> (N_QUBITS - 1 - ctrl)) & 1
            perm = _IDX ^ (cbit << (N_QUBITS - 1 - tgt))
            u_re, u_im = u_re[perm], u_im[perm]
    top = jnp.concatenate([u_re.T, u_im.T], axis=1)     # (16, 32)
    bot = jnp.concatenate([-u_im.T, u_re.T], axis=1)    # (16, 32)
    return jnp.concatenate([top, bot], axis=0)          # (32, 32)


# ----------------------------------------------------------------------------
# Kernel core: product state -> MXU matmul -> expvals -> softmax -> sample
# ----------------------------------------------------------------------------
def _finish(cin, sin_, m_ref, beta_ref, u_ref, out_ref):
    """cin/sin_: (tb,4) half-angle trig of the normalized per-env inputs;
       m_ref: (32,32) folded weight unitary; beta scalar; u: (tb,1) uniforms."""
    tb = cin.shape[0]
    lane32 = lax.broadcasted_iota(jnp.int32, (tb, 2 * DIM), 1)
    basis = lane32 & (DIM - 1)             # lanes [0..15]=Re part, [16..31]=Im

    # |psi_in> = prod_w RX(theta_w)|0> (tensor product, elementwise VPU only):
    # amp(b) = (-i)^popcount(b) * prod_w (cos_w if bit_w==0 else sin_w).
    prod = None
    for w in range(N_QUBITS):
        bit_w = (basis & (1 << (N_QUBITS - 1 - w))) != 0
        fac = jnp.where(bit_w, sin_[:, w:w + 1], cin[:, w:w + 1])
        prod = fac if prod is None else prod * fac

    pop = ((basis >> 3) & 1) + ((basis >> 2) & 1) + ((basis >> 1) & 1) + (basis & 1)
    is_im = lane32 >= DIM
    # (-i)^pop: real part cycles +1,0,-1,0 ; imag part cycles 0,-1,0,+1.
    phase_re = jnp.where((pop & 1) == 0, jnp.where((pop & 3) == 0, 1.0, -1.0), 0.0)
    phase_im = jnp.where((pop & 1) == 1, jnp.where((pop & 3) == 1, -1.0, 1.0), 0.0)
    in32 = prod * jnp.where(is_im, phase_im, phase_re)          # (tb, 32)

    # Weight-only circuit unitary applied with a single MXU matmul.
    out32 = jnp.dot(in32, m_ref[...], preferred_element_type=jnp.float32)

    # <Z0>, <Z1>: sign depends only on the basis bit (same for Re/Im halves).
    sq = out32 * out32
    sign0 = jnp.where((basis & (1 << (N_QUBITS - 1))) != 0, -1.0, 1.0)
    sign1 = jnp.where((basis & (1 << (N_QUBITS - 2))) != 0, -1.0, 1.0)
    ez0 = jnp.sum(sq * sign0, axis=1, keepdims=True)            # (tb, 1)
    ez1 = jnp.sum(sq * sign1, axis=1, keepdims=True)

    # softmax(beta * out, dim=-1) over the two logits + inverse-CDF sampling.
    beta = beta_ref[0]
    z0, z1 = beta * ez0, beta * ez1
    mx = jnp.maximum(z0, z1)
    e0, e1 = jnp.exp(z0 - mx), jnp.exp(z1 - mx)
    denom = e0 + e1
    logz = jnp.log(denom)
    p0 = e0 / denom
    logp0 = (z0 - mx) - logz
    logp1 = (z1 - mx) - logz

    # TODO(synk): torch.distributions.Categorical.sample() consumes torch's RNG
    # stream; only the distribution semantics (inverse CDF on an explicit
    # uniform) are reproduced here.
    u = u_ref[...]
    take1 = u >= p0
    act_f = take1.astype(jnp.float32)
    logp = jnp.where(take1, logp1, logp0)

    # Lane-dense packed output: lane 0 = action, lanes 1.. = log_prob.
    lane = lax.broadcasted_iota(jnp.int32, (tb, LANES), 1)
    out_ref[...] = jnp.where(lane == 0, act_f, logp)


def _policy_kernel_fused(states_ref, m_ref, beta_ref, u_ref, out_ref):
    # normalize() + half-angle trig on the VPU/EUP, fused in-kernel.
    x = states_ref[...]                                     # (tb, 4)
    ax = jnp.abs(x)
    nrm = jnp.maximum(jnp.maximum(ax[:, 0:1], ax[:, 1:2]),
                      jnp.maximum(ax[:, 2:3], ax[:, 3:4]))
    nrm = jnp.maximum(nrm, 1e-30)   # guard (original normalize NaNs on all-zero obs)
    half = 0.5 * (x / nrm)
    _finish(jnp.cos(half), jnp.sin(half), m_ref, beta_ref, u_ref, out_ref)


def _policy_kernel_precomp(cin_ref, sin_ref, m_ref, beta_ref, u_ref, out_ref):
    _finish(cin_ref[...], sin_ref[...], m_ref, beta_ref, u_ref, out_ref)


# ----------------------------------------------------------------------------
# Wrapper
# ----------------------------------------------------------------------------
def _ceil_to(x, m):
    return -(-x // m) * m


def make_policy_forward(batch, trig_in_kernel=_TRIG_IN_KERNEL, block_rows=128):
    """Batched forward for `batch` environments.  Returns a jitted function
        forward(states (B,4), m32 (32,32), beta (1,), u (B,))
            -> (actions (B,) int32, log_probs (B,) f32)
    where m32 = build_weight_matrix(weights) is recomputed only when the
    quantum-layer weights change (once per optimizer step)."""
    b_pad = _ceil_to(max(batch, 1), 8)
    if b_pad > block_rows:
        b_pad = _ceil_to(b_pad, block_rows)
        tb = block_rows
    else:
        tb = b_pad
    grid = (b_pad // tb,)

    env_spec = pl.BlockSpec((tb, N_QUBITS), lambda i: (i, 0))
    m_spec = pl.BlockSpec((2 * DIM, 2 * DIM), lambda i: (0, 0))
    beta_spec = pl.BlockSpec(memory_space=pltpu.MemorySpace.SMEM)
    u_spec = pl.BlockSpec((tb, 1), lambda i: (i, 0))
    out_spec = pl.BlockSpec((tb, LANES), lambda i: (i, 0))
    out_shape = jax.ShapeDtypeStruct((b_pad, LANES), jnp.float32)
    # "parallel" so v7x's two TensorCores can split large env batches; with a
    # single tile (small batch) the grid is (1,) and this costs nothing.
    cparams = pltpu.CompilerParams(dimension_semantics=("parallel",))

    def _pad(x):
        if x.shape[0] == b_pad:
            return x
        return jnp.pad(x, ((0, b_pad - x.shape[0]), (0, 0)))

    if trig_in_kernel:
        call = pl.pallas_call(
            _policy_kernel_fused, out_shape=out_shape, grid=grid,
            in_specs=[env_spec, m_spec, beta_spec, u_spec],
            out_specs=out_spec, compiler_params=cparams)

        @jax.jit
        def forward(states, m32, beta, u):
            s = _pad(states.astype(jnp.float32).reshape(batch, N_QUBITS))
            uu = _pad(u.astype(jnp.float32).reshape(batch, 1))
            packed = call(s, m32.astype(jnp.float32),
                          beta.astype(jnp.float32).reshape(-1), uu)
            return packed[:batch, 0].astype(jnp.int32), packed[:batch, 1]
    else:
        call = pl.pallas_call(
            _policy_kernel_precomp, out_shape=out_shape, grid=grid,
            in_specs=[env_spec, env_spec, m_spec, beta_spec, u_spec],
            out_specs=out_spec, compiler_params=cparams)

        @jax.jit
        def forward(states, m32, beta, u):
            x = states.astype(jnp.float32).reshape(batch, N_QUBITS)
            nrm = jnp.maximum(jnp.max(jnp.abs(x), axis=1, keepdims=True), 1e-30)
            half = 0.5 * (x / nrm)
            uu = _pad(u.astype(jnp.float32).reshape(batch, 1))
            packed = call(_pad(jnp.cos(half)), _pad(jnp.sin(half)),
                          m32.astype(jnp.float32),
                          beta.astype(jnp.float32).reshape(-1), uu)
            return packed[:batch, 0].astype(jnp.int32), packed[:batch, 1]

    return forward


# ----------------------------------------------------------------------------
# Pure-numpy reference (independent float64 statevector simulation)
# ----------------------------------------------------------------------------
def _ref_probs(state, weights, beta):
    state = np.asarray(state, np.float64)
    weights = np.asarray(weights, np.float64)
    inpts = state / np.max(np.abs(state))
    psi = np.zeros(DIM, np.complex128); psi[0] = 1.0

    def apply_1q(psi, U, w):
        t = psi.reshape((2,) * N_QUBITS)
        t = np.moveaxis(t, w, 0)
        t = np.tensordot(U, t, axes=([1], [0]))
        t = np.moveaxis(t, 0, w)
        return t.reshape(DIM)

    def rx(th):
        c, s = np.cos(th / 2), np.sin(th / 2)
        return np.array([[c, -1j * s], [-1j * s, c]])

    def ry(th):
        c, s = np.cos(th / 2), np.sin(th / 2)
        return np.array([[c, -s], [s, c]], dtype=np.complex128)

    def rz(th):
        return np.array([[np.exp(-0.5j * th), 0.0], [0.0, np.exp(0.5j * th)]])

    idx = np.arange(DIM)

    def cnot(psi, c, t):
        bc = (idx >> (N_QUBITS - 1 - c)) & 1
        perm = idx ^ (bc << (N_QUBITS - 1 - t))
        return psi[perm]

    for q in range(N_QUBITS):
        psi = apply_1q(psi, rx(inpts[q]), q)
    for l in range(N_LAYERS):
        for q in range(N_QUBITS):
            psi = apply_1q(psi, ry(weights[l, q, 0]), q)
            psi = apply_1q(psi, rz(weights[l, q, 1]), q)
        l_eff = 0 if ((l + 1) % N_QUBITS == 0) else l
        for q1 in range(N_QUBITS):
            psi = cnot(psi, q1, (q1 + l_eff + 1) % N_QUBITS)

    prob = np.abs(psi) ** 2
    ez = [np.sum((1.0 - 2.0 * ((idx >> (N_QUBITS - 1 - w)) & 1)) * prob)
          for w in (0, 1)]
    logits = float(beta) * np.array(ez)
    logits = logits - logits.max()
    p = np.exp(logits)
    return p / p.sum()


# ----------------------------------------------------------------------------
if __name__ == "__main__":
    key = jax.random.PRNGKey(0)
    kw, kt1, kt2 = jax.random.split(key, 3)

    weights0 = jax.random.uniform(kw, (N_LAYERS, N_QUBITS, 2), jnp.float32,
                                  minval=-jnp.pi, maxval=jnp.pi)
    beta = jnp.ones((1,), jnp.float32)              # nn.Parameter(torch.ones(1))
    m32 = build_weight_matrix(weights0)             # once per weight update
    jax.block_until_ready(m32)

    w_np = np.asarray(weights0)
    # batch=64 -> single-tile grid; batch=200 -> padded 256, multi-tile grid.
    for batch, kk in ((64, kt1), (200, kt2)):
        ks, ku = jax.random.split(kk)
        states = jax.random.normal(ks, (batch, N_QUBITS), jnp.float32)
        u = jax.random.uniform(ku, (batch,), jnp.float32)

        forward = make_policy_forward(batch)
        actions, logps = forward(states, m32, beta, u)
        jax.block_until_ready((actions, logps))

        a_np, lp_np = np.asarray(actions), np.asarray(logps)
        s_np, u_np = np.asarray(states), np.asarray(u)
        for b in range(batch):
            p = _ref_probs(s_np[b], w_np, float(beta[0]))
            ref_a = 0 if u_np[b] < p[0] else 1
            a = int(a_np[b])
            # Allow an action flip only right at the CDF boundary (f32 vs f64).
            assert a == ref_a or abs(float(u_np[b]) - p[0]) < 5e-3, \
                (batch, b, a, ref_a, float(u_np[b]), p[0])
            assert abs(float(lp_np[b]) - np.log(p[a])) < 1e-2, \
                (batch, b, float(lp_np[b]), float(np.log(p[a])))

    print("KERNEL_OK")
</pallas_src>

<mosaic_0001>
module attributes {stable_mosaic.version = 11 : i64} {
  func.func @k(%arg0: memref<8x128xf32, #tpu.memory_space<vmem>>, %arg1: memref<8x128xf32, #tpu.memory_space<vmem>>) attributes {dimension_semantics = [], scalar_prefetch = 0 : i64, scratch_operands = 0 : i64, tpu.core_type = #tpu.core_type<tc>} {
    %c0 = arith.constant 0 : index
    %c0_0 = arith.constant 0 : index
    %0 = vector.load %arg0[%c0, %c0_0] : memref<8x128xf32, #tpu.memory_space<vmem>>, vector<8x128xf32>
    %1 = math.sin %0 : vector<8x128xf32>
    %c0_1 = arith.constant 0 : index
    %c0_2 = arith.constant 0 : index
    %2 = vector.load %arg0[%c0_1, %c0_2] : memref<8x128xf32, #tpu.memory_space<vmem>>, vector<8x128xf32>
    %3 = math.cos %2 : vector<8x128xf32>
    %4 = arith.addf %1, %3 : vector<8x128xf32>
    %c0_3 = arith.constant 0 : index
    %c0_4 = arith.constant 0 : index
    %5 = vector.load %arg1[%c0_3, %c0_4] : memref<8x128xf32, #tpu.memory_space<vmem>>, vector<8x128xf32>
    tpu.vector_store %arg1[%c0_3, %c0_4], %4 {strides = array<i32>} : memref<8x128xf32, #tpu.memory_space<vmem>>, vector<8x128xf32>,
    return
  }
}

</mosaic_0001>

<bundles_post_ra>
// kernel: tpu_custom_call.1
= control target key start
LH: loop header
LB: loop body
LE: loop exit
PB: predicated region body
PF: predicated region fallthrough
CT: control target
= control target key end

     0   :  { %6 = vsyncpa [#allocation3], 0  ;;  %s490_s0 = inlined_call_operand.hbm [shape: f32[8,128], index: 0, kind: input, shape index: {}]   ;;  %s491_s1 = inlined_call_operand.hbm [shape: f32[8,128], index: 1, kind: output, shape index: {}]  }
   0x1   :  { %7 = vsyncpa [#allocation4], 0  ;;  %s13_s8 = sshll.u32 %s490_s0, 4  ;;  %s419_s9 = smov [#allocation2]   ;;  %s14_s8 = int_to_ptr.hbm [resolvable:$true] %s13_s8 }
   0x2   :  { %s15_s10 = sshll.u32 %s419_s9, 4  ;;  %s16_s10 = int_to_ptr.vmem [resolvable:$true] %s15_s10 }
   0x3   :  { %18 = dma.hbm_to_vmem [thread:$0]  %s14_s8, 128, %s16_s10, [#allocation3]  }
   0x4   :  { %415 = dma.done.wait [#allocation3], 128  }
   0x5   :  { %416 = vsyncadd [#allocation3], 4294967168  ;;  %v441_v0 = vld [vmem:[#allocation2] sm:$0xff]  ;;  %v420_v12 = vmov 683565275   ;;  %s427_s0 = smov [#allocation5]  }
   0x6   :  { %v27_v1 = vand.u32 2139095040, %v441_v0  ;;  %v24_v3 = vand.u32 2147483647, %v441_v0  ;;  %v421_v14 = vmov 2475754826   ;;  %vm26_vm12 = vcmp.lt.s32.totalorder %v441_v0, 0 }
   0x7   :  { %v422_v16 = vmov 2131351028   ;;  %v423_v18 = vmov 2102212464   ;;  %v424_v20 = vmov 920167782  }
   0x8   :  { %v28_v2 = vshrl.u32 %v27_v1, 23  ;;  %v31_v6 = vand.u32 8388607, %v24_v3  ;;  %v425_v26 = vmov 1326507024   ;;  %v426_v1 = vmov 0  }
   0x9   :  { %vm25_vm13 = vcmp.le.f32.partialorder %v24_v3, 0.7853982  ;;  %s340_s11 = sshll.u32 %s427_s0, 4  ;;  %s342_s14 = sshll.u32 %s491_s1, 4  ;;  %s341_s11 = int_to_ptr.vmem [resolvable:$true] %s340_s11  ;;  %s343_s14 = int_to_ptr.hbm [resolvable:$true] %s342_s14 }
   0xa   :  { %v352_v4 = vadd.s32 4294967169, %v28_v2  ;;  %v32_v9 = vor.u32 8388608, %v31_v6 }
   0xc   :  { %v34_v5 = vadd.s32 1, %v352_v4  ;;  %v450_v28 = vshll.u32 %v32_v9, 8 }
   0xe   :  { %vm35_vm0 = vcmp.gt.s32.totalorder %v34_v5, 0  ;;  %v73_v40 = vand.u32 65535, %v450_v28  ;;  %v74_v41 = vshrl.u32 %v450_v28, 16 }
   0xf   :  { %v36_v7 = vsel %vm35_vm0, %v34_v5, 0 }
  0x10   :  { %v38_v8 = vand.u32 31, %v36_v7  ;;  %v447_v10 = vshrl.u32 %v36_v7, 5 }
  0x12   :  { %v39_v11 = vsub.s32 32, %v38_v8  ;;  %v41_v13 = vshll.u32 %v420_v12, %v38_v8  ;;  %v44_v15 = vshll.u32 %v421_v14, %v38_v8  ;;  %v47_v17 = vshll.u32 %v422_v16, %v38_v8 }
  0x13   :  { %v50_v19 = vshll.u32 %v423_v18, %v38_v8  ;;  %v53_v21 = vshll.u32 %v424_v20, %v38_v8  ;;  %vm56_vm1 = vcmp.lt.s32.totalorder %v447_v10, 1  ;;  %vm59_vm2 = vcmp.lt.s32.totalorder %v447_v10, 4 }
  0x14   :  { %v42_v22 = vshrl.u32 %v421_v14, %v39_v11  ;;  %v45_v23 = vshrl.u32 %v422_v16, %v39_v11  ;;  %v48_v24 = vshrl.u32 %v423_v18, %v39_v11  ;;  %v51_v25 = vshrl.u32 %v424_v20, %v39_v11 }
  0x15   :  { %v54_v27 = vshrl.u32 %v425_v26, %v39_v11  ;;  %vm58_vm3 = vcmp.lt.s32.totalorder %v447_v10, 3  ;;  %vm57_vm4 = vcmp.lt.s32.totalorder %v447_v10, 2  ;;  %v40_v48 = vshrl.u32 %v420_v12, %v39_v11 }
  0x16   :  { %v43_v29 = vor.u32 %v42_v22, %v41_v13  ;;  %v46_v30 = vor.u32 %v45_v23, %v44_v15  ;;  %v49_v31 = vor.u32 %v48_v24, %v47_v17  ;;  %v52_v32 = vor.u32 %v51_v25, %v50_v19 }
  0x17   :  { %v55_v33 = vor.u32 %v54_v27, %v53_v21 }
  0x18   :  { %v64_v34 = vsel %vm56_vm1, %v43_v29, %v46_v30  ;;  %v68_v35 = vsel %vm56_vm1, %v46_v30, %v49_v31  ;;  %v65_v36 = vsel %vm59_vm2, %v52_v32, 920167782  ;;  %v60_v61 = vsel %vm56_vm1, %v40_v48, %v43_v29 }
  0x19   :  { %v69_v37 = vsel %vm59_vm2, %v55_v33, 1326507024  ;;  %v66_v38 = vsel %vm58_vm3, %v49_v31, %v65_v36  ;;  %v61_v63 = vsel %vm59_vm2, %v49_v31, 2102212464 }
  0x1a   :  { %v70_v39 = vsel %vm58_vm3, %v52_v32, %v69_v37  ;;  %v67_v42 = vsel %vm57_vm4, %v64_v34, %v66_v38  ;;  %v62_v12 = vsel %vm58_vm3, %v46_v30, %v61_v63 }
  0x1b   :  { %v71_v43 = vsel %vm57_vm4, %v68_v35, %v70_v39  ;;  %v97_v46 = vand.u32 65535, %v67_v42  ;;  %v98_v47 = vshrl.u32 %v67_v42, 16  ;;  %v63_v20 = vsel %vm57_vm4, %v60_v61, %v62_v12 }
  0x1c   :  { %v75_v44 = vand.u32 65535, %v71_v43  ;;  %v76_v45 = vshrl.u32 %v71_v43, 16  ;;  %v117_v24 = vmul.u32 %v450_v28, %v63_v20  ;;  %vm167_vm4 = vweird.f32 %v441_v0 }
  0x1d   :  { %v99_v52 = vmul.u32 %v97_v46, %v73_v40  ;;  %v100_v53 = vmul.u32 %v98_v47, %v73_v40  ;;  %v101_v54 = vmul.u32 %v97_v46, %v74_v41  ;;  %v102_v58 = vmul.u32 %v98_v47, %v74_v41 }
  0x1e   :  { %v77_v49 = vmul.u32 %v75_v44, %v73_v40  ;;  %v78_v50 = vmul.u32 %v76_v45, %v73_v40  ;;  %v79_v51 = vmul.u32 %v75_v44, %v74_v41  ;;  %v80_v55 = vmul.u32 %v76_v45, %v74_v41 }
  0x1f   :  { %v103_v59 = vshll.u32 %v100_v53, 16  ;;  %v105_v60 = vshll.u32 %v101_v54, 16  ;;  %v104_v9 = vshrl.u32 %v100_v53, 16  ;;  %v106_v16 = vshrl.u32 %v101_v54, 16 }
  0x20   :  { %v81_v56 = vshll.u32 %v78_v50, 16  ;;  %v83_v57 = vshll.u32 %v79_v51, 16  ;;  %v82_v5 = vshrl.u32 %v78_v50, 16  ;;  %v84_v13 = vshrl.u32 %v79_v51, 16 }
  0x21   :  { %vm107_vm6 = vc.u32 %v99_v52, %v103_v59  ;;  %v109_v4 = vadd.s32 %v103_v59, %v99_v52 }
  0x22   :  { %vm85_vm5 = vc.u32 %v77_v49, %v81_v56  ;;  %v87_v62 = vadd.s32 %v81_v56, %v77_v49  ;;  %v108_v7 = vsel %vm107_vm6, 1, %v426_v1 }
  0x23   :  { %v86_v2 = vsel %vm85_vm5, 1, %v426_v1  ;;  %v110_v11 = vadd.s32 %v108_v7, %v102_v58  ;;  %vm111_vm8 = vc.u32 %v109_v4, %v105_v60  ;;  %v113_v19 = vadd.s32 %v109_v4, %v105_v60 }
  0x24   :  { %v88_v6 = vadd.s32 %v86_v2, %v80_v55  ;;  %vm89_vm7 = vc.u32 %v87_v62, %v83_v57  ;;  %v112_v15 = vsel %vm111_vm8, 1, %v426_v1 }
  0x25   :  { %v90_v8 = vsel %vm89_vm7, 1, %v426_v1  ;;  %v114_v17 = vadd.s32 %v112_v15, %v110_v11 }
  0x26   :  { %v92_v14 = vadd.s32 %v90_v8, %v88_v6 }
  0x27   :  { %v115_v21 = vadd.s32 %v114_v17, %v104_v9 }
  0x28   :  { %v93_v18 = vadd.s32 %v92_v14, %v82_v5 }
  0x29   :  { %v116_v23 = vadd.s32 %v115_v21, %v106_v16 }
  0x2a   :  { %v94_v22 = vadd.s32 %v93_v18, %v84_v13 }
  0x2b   :  { %v120_v25 = vadd.s32 1, %v116_v23 }
  0x2c   :  { %vm119_vm9 = vc.u32 %v94_v22, %v113_v19  ;;  %v118_v10 = vadd.s32 %v113_v19, %v94_v22 }
  0x2d   :  { %v121_v26 = vsel %vm119_vm9, %v120_v25, %v116_v23 }
  0x2e   :  { %v122_v27 = vadd.s32 %v121_v26, %v117_v24 }
  0x30   :  { %v123_v29 = vadd.s32 536870912, %v122_v27 }
  0x32   :  { %v124_v30 = vshrl.u32 %v123_v29, 30 }
  0x34   :  { %v125_v31 = vshll.u32 %v124_v30, 30  ;;  %v148_v48 = vsub.s32 4, %v124_v30 }
  0x36   :  { %v126_v32 = vsub.s32 %v122_v27, %v125_v31  ;;  %v149_v51 = vsel %vm26_vm12, %v148_v48, %v124_v30 }
  0x37   :  { %v151_v54 = vsel %vm25_vm13, 0, %v149_v51 }
  0x38   :  { %vm127_vm10 = vcmp.lt.s32.totalorder %v126_v32, 0  ;;  %v128_v33 = vsub.s32 0, %v126_v32  ;;  %v168_v59 = vadd.s32 3, %v151_v54  ;;  %v323_v2 = vand.u32 3, %v151_v54 }
  0x3a   :  { %v129_v34 = vsel %vm127_vm10, %v128_v33, %v126_v32  ;;  %v169_v1 = vand.u32 3, %v168_v59  ;;  %vm328_vm15 = vcmp.eq.s32.totalorder %v323_v2, 2  ;;  %vm325_vm2 = vcmp.eq.s32.totalorder %v323_v2, 0 }
  0x3b   :  { %v130_v35 = vclz %v129_v34  ;;  %vm324_vm3 = vcmp.lt.s32.totalorder %v323_v2, 2 }
  0x3c   :  { %vm174_vm14 = vcmp.eq.s32.totalorder %v169_v1, 2  ;;  %vm170_vm0 = vcmp.lt.s32.totalorder %v169_v1, 2  ;;  %vm171_vm1 = vcmp.eq.s32.totalorder %v169_v1, 0 }
  0x3d   :  { %v353_v36 = vadd.s32 4294967294, %v130_v35 }
  0x3f   :  { %vm354_vm11 = vcmp.lt.s32.totalorder %v353_v36, 0 }
  0x40   :  { %v133_v37 = vsel %vm354_vm11, 0, %v353_v36 }
  0x41   :  { %v134_v38 = vsub.s32 32, %v133_v37  ;;  %v135_v39 = vshll.u32 %v126_v32, %v133_v37  ;;  %v138_v40 = vsub.s32 4294967266, %v133_v37 }
  0x43   :  { %v136_v28 = vshrl.u32 %v118_v10, %v134_v38  ;;  %v139_v41 = vadd.s32 127, %v138_v40 }
  0x45   :  { %v137_v42 = vor.u32 %v136_v28, %v135_v39  ;;  %v140_v43 = vshll.u32 %v139_v41, 23 }
  0x47   :  { %v141_v44 = vor.u32 4788187, %v140_v43  ;;  %v144_v45 = vcvt.s32.f32 %v137_v42 }
  0x49   :  { %v142_v46 = vand.u32 2147483647, %v141_v44 }
  0x4b   :  { %v145_v47 = vmul.f32 %v144_v45, %v142_v46 }
  0x4d   :  { %v146_v49 = vxor.u32 2147483648, %v145_v47 }
  0x4f   :  { %v147_v50 = vsel %vm26_vm12, %v146_v49, %v145_v47 }
  0x50   :  { %v150_v52 = vsel %vm25_vm13, %v441_v0, %v147_v50 }
  0x51   :  { %v152_v53 = vmul.f32 %v150_v52, %v150_v52 }
  0x53   :  { %v153_v55 = vmul.f32 -0.001358992, %v152_v53  ;;  %v160_v56 = vmul.f32 -0.00019511016, %v152_v53 }
  0x55   :  { %v154_v57 = vadd.f32 0.041655596, %v153_v55  ;;  %v161_v58 = vadd.f32 0.008332121, %v160_v56 }
  0x57   :  { %v155_v60 = vmul.f32 %v154_v57, %v152_v53  ;;  %v162_v61 = vmul.f32 %v161_v58, %v152_v53 }
  0x59   :  { %v156_v62 = vadd.f32 -0.4999988, %v155_v60  ;;  %v163_v63 = vadd.f32 -0.16666654, %v162_v61 }
  0x5b   :  { %v157_v4 = vmul.f32 %v156_v62, %v152_v53  ;;  %v164_v3 = vmul.f32 %v163_v63, %v152_v53 }
  0x5d   :  { %v158_v5 = vadd.f32 1.0, %v157_v4  ;;  %v165_v6 = vadd.f32 1.0, %v164_v3 }
  0x5f   :  { %v166_v7 = vmul.f32 %v165_v6, %v150_v52  ;;  %v175_v8 = vxor.u32 2147483648, %v158_v5 }
  0x61   :  { %v172_v9 = vxor.u32 2147483648, %v166_v7  ;;  %v176_v11 = vsel %vm174_vm14, %v175_v8, %v166_v7  ;;  %v330_v12 = vsel %vm328_vm15, %v175_v8, %v166_v7 }
  0x63   :  { %v173_v13 = vsel %vm171_vm1, %v158_v5, %v172_v9  ;;  %v327_v14 = vsel %vm325_vm2, %v158_v5, %v172_v9 }
  0x64   :  { %v177_v15 = vsel %vm170_vm0, %v173_v13, %v176_v11  ;;  %v331_v16 = vsel %vm324_vm3, %v327_v14, %v330_v12 }
  0x65   :  { %v178_v17 = vsel %vm167_vm4, nan, %v177_v15  ;;  %v332_v18 = vsel %vm167_vm4, nan, %v331_v16 }
  0x66   :  { %v333_v19 = vadd.f32 %v332_v18, %v178_v17 }
  0x68   :  { %334 = vst [vmem:[#allocation5] sm:$0xff] %v333_v19 }
  0x69   :  { %345 = dma.vmem_to_hbm [thread:$0]  %s341_s11, 128, %s343_s14, [#allocation4]  }
  0x6a   :  { %417 = dma.done.wait [#allocation4], 128  }
  0x6b   :  { %418 = vsyncadd [#allocation4], 4294967168 }
  0x6c   :  { %350 = vsyncpa [#allocation3], 1 }
  0x6d   :  { %351 = vsyncpa [#allocation4], 1 }

</bundles_post_ra>
